<compile_context>
chip_gen: v6e
topology: v6e:2x2x1
jax: 0.10.0
libtpu: 0.0.40
codegen_flags: <defaults>
</compile_context>

<pallas_src>
import jax
import jax.numpy as jnp
from jax.experimental import pallas as pl
from jax.experimental.pallas import tpu as pltpu

_LANE = 128
_SUBLANE = 8


def _drop_path_kernel(scale_ref, x_ref, o_ref):
    """One tile: out = x * per-sample scale (scale broadcasts over trailing dims)."""
    o_ref[...] = x_ref[...] * scale_ref[...]


def _round_down(v, m):
    return (v // m) * m


def _pick_tile_len(total, gran, unit_bytes, tile_bytes, min_tiles=4):
    """Tile length along the single tiled axis.

    Multiple of `gran` (or == `total`, which is always a legal block dim), fits the
    per-buffer VMEM budget `tile_bytes`, and — when the axis is big enough — leaves at
    least `min_tiles` grid steps so a v7x 'parallel' axis has work for both TCs.
    """
    if total <= gran:
        return total
    budget = max(gran, _round_down(tile_bytes // max(1, unit_bytes), gran))
    if total >= min_tiles * gran:
        budget = min(budget, max(gran, _round_down(total // min_tiles, gran)))
    if budget >= total:
        return total
    return budget


def drop_path_pallas(x, drop_prob=0.1, training=True, *, key=None,
                     tile_bytes=2 << 20, small_bypass_bytes=1 << 20):
    """Pallas DropPath forward.  `key` must be a fresh jax PRNG key per call."""
    if drop_prob == 0.0 or not training:
        return x
    keep_prob = 1.0 - drop_prob
    if keep_prob <= 0.0:
        # drop_prob == 1: every path dropped (avoids 1/0 -> inf*0 NaN).
        return jnp.zeros_like(x)
    if key is None:
        raise ValueError(
            "drop_path_pallas: an explicit PRNG `key` is required when the drop path "
            "is active (a fixed fallback key would drop the same samples every step).")

    B = x.shape[0]
    orig_shape = x.shape
    flat = 1
    for d in x.shape[1:]:
        flat *= d

    # --- per-sample keep/scale, computed once in the wrapper, already in x.dtype ---
    u = jax.random.uniform(key, (B,), dtype=jnp.float32)
    mask = jnp.floor(jnp.float32(keep_prob) + u)                      # {0., 1.}
    scale = (mask * jnp.float32(1.0 / keep_prob)).astype(x.dtype)     # (B,)

    # --- tiny-activation bypass: an XLA-fused broadcast multiply beats kernel overhead ---
    itemsize = jnp.dtype(x.dtype).itemsize
    if flat == 0 or x.size * itemsize <= small_bypass_bytes:
        return x * scale.reshape((B,) + (1,) * (x.ndim - 1))

    params = pltpu.CompilerParams(dimension_semantics=("parallel",))

    if flat % _LANE == 0:
        # ---- sublane-dense 3-D path: (B, R, 128) view, tiles of (B, TR, 128) ----
        R = flat // _LANE
        x3 = x.reshape(B, R, _LANE)            # free bitcast reshape
        scale3 = scale.reshape(B, 1, 1)
        unit_bytes = B * _LANE * itemsize      # bytes per +1 row of TR
        tr = _pick_tile_len(R, _SUBLANE, unit_bytes, tile_bytes)
        grid = (pl.cdiv(R, tr),)               # ragged last tile -> masked store only
        out = pl.pallas_call(
            _drop_path_kernel,
            out_shape=jax.ShapeDtypeStruct((B, R, _LANE), x.dtype),
            grid=grid,
            in_specs=[
                pl.BlockSpec((B, 1, 1), lambda j: (0, 0, 0)),       # resident scale
                pl.BlockSpec((B, tr, _LANE), lambda j: (0, j, 0)),  # (8,128)-dense tile
            ],
            out_specs=pl.BlockSpec((B, tr, _LANE), lambda j: (0, j, 0)),
            compiler_params=params,
        )(scale3, x3)
        return out.reshape(orig_shape)

    # ---- ragged 2-D fallback (flat not a multiple of 128): no pad, cdiv grid ----
    # TODO(synk): when B < 8 this path under-packs sublanes; acceptable for the rare
    # non-128-multiple trailing size (ViT hidden dims are multiples of 128).
    x2 = x.reshape(B, flat)
    scale2 = scale.reshape(B, 1)
    unit_bytes = B * itemsize                  # bytes per +1 column of TC
    tc = _pick_tile_len(flat, _LANE, unit_bytes, tile_bytes)
    grid = (pl.cdiv(flat, tc),)
    out = pl.pallas_call(
        _drop_path_kernel,
        out_shape=jax.ShapeDtypeStruct((B, flat), x.dtype),
        grid=grid,
        in_specs=[
            pl.BlockSpec((B, 1), lambda j: (0, 0)),
            pl.BlockSpec((B, tc), lambda j: (0, j)),
        ],
        out_specs=pl.BlockSpec((B, tc), lambda j: (0, j)),
        compiler_params=params,
    )(scale2, x2)
    return out.reshape(orig_shape)


if __name__ == "__main__":
    root = jax.random.PRNGKey(0)
    kx, kbig, kdrop1, kdrop2, kdrop3 = jax.random.split(root, 5)

    drop_prob = 0.1
    keep_prob = 1.0 - drop_prob

    # 1) ViT-token-like small shape (B=2, seq=8, hidden=32): flat=256 -> 3-D path.
    B, N, D = 2, 8, 32
    x = jax.random.normal(kx, (B, N, D), dtype=jnp.float32)
    y = jax.block_until_ready(
        drop_path_pallas(x, drop_prob, True, key=kdrop1, small_bypass_bytes=0))
    for b in range(B):
        yb = y[b]
        ok_kept = bool(jnp.allclose(yb, x[b] / keep_prob, atol=1e-5))
        ok_dropped = bool(jnp.allclose(yb, 0.0))
        assert ok_kept or ok_dropped, "sample neither kept nor dropped"

    # 2) Non-128-multiple trailing size (flat=105) exercises the ragged 2-D path.
    x_odd = jax.random.normal(kx, (2, 3, 5, 7), dtype=jnp.float32)
    y_odd = jax.block_until_ready(
        drop_path_pallas(x_odd, drop_prob, True, key=kdrop2, small_bypass_bytes=0))
    for b in range(2):
        yb = y_odd[b]
        ok_kept = bool(jnp.allclose(yb, x_odd[b] / keep_prob, atol=1e-5))
        ok_dropped = bool(jnp.allclose(yb, 0.0))
        assert ok_kept or ok_dropped, "odd-shape sample neither kept nor dropped"

    # 3) Medium shape (B=8, 64 tokens, hidden=384): multi-tile 3-D path; exact match
    #    against a pure-jnp reference that uses the identical mask construction.
    Bb, Nb, Db = 8, 64, 384
    xb = jax.random.normal(kbig, (Bb, Nb, Db), dtype=jnp.float32)
    yb = jax.block_until_ready(
        drop_path_pallas(xb, drop_prob, True, key=kdrop3, small_bypass_bytes=0))
    u_ref = jax.random.uniform(kdrop3, (Bb,), dtype=jnp.float32)
    scale_ref = (jnp.floor(jnp.float32(keep_prob) + u_ref)
                 * jnp.float32(1.0 / keep_prob)).astype(xb.dtype).reshape(Bb, 1, 1)
    ref = xb * scale_ref
    assert bool(jnp.allclose(yb, ref, atol=1e-6)), "pallas output != jnp reference"

    # Bypass path (defaults) must agree with the forced-kernel path.
    y_bypass = jax.block_until_ready(drop_path_pallas(x, drop_prob, True, key=kdrop1))
    assert bool(jnp.allclose(y_bypass, y, atol=1e-6))

    # 4) Eval / drop_prob==0 are identity; drop_prob==1 is all-zeros.
    assert bool(jnp.allclose(drop_path_pallas(x, drop_prob, False), x))
    assert bool(jnp.allclose(drop_path_pallas(x, 0.0, True, key=kdrop1), x))
    assert bool(jnp.allclose(drop_path_pallas(x, 1.0, True, key=kdrop1), 0.0))

    # 5) Active drop path without a key must raise (no silent fixed-key fallback).
    raised = False
    try:
        drop_path_pallas(x, drop_prob, True)
    except ValueError:
        raised = True
    assert raised, "missing key did not raise"

    print("KERNEL_OK")
</pallas_src>

<mosaic_0001>
module attributes {stable_mosaic.version = 11 : i64} {
  func.func @_drop_path_kernel(%arg0: i32, %arg1: memref<2x1x1xf32, #tpu.memory_space<vmem>>, %arg2: memref<2x2x128xf32, #tpu.memory_space<vmem>>, %arg3: memref<2x2x128xf32, #tpu.memory_space<vmem>>) attributes {dimension_semantics = [#tpu.dimension_semantics<parallel>], iteration_bounds = array<i64: 1>, scalar_prefetch = 0 : i64, scratch_operands = 0 : i64, tpu.core_type = #tpu.core_type<tc>, window_params = [{pipeline_mode = #tpu.pipeline_mode<synchronous>, transform_indices = @transform_0, window_bounds = array<i64: 2, 1, 1>}, {transform_indices = @transform_1, window_bounds = array<i64: 2, 2, 128>}, {transform_indices = @transform_2, window_bounds = array<i64: 2, 2, 128>}]} {
    %c0 = arith.constant 0 : index
    %c0_0 = arith.constant 0 : index
    %c0_1 = arith.constant 0 : index
    %0 = vector.load %arg2[%c0, %c0_0, %c0_1] : memref<2x2x128xf32, #tpu.memory_space<vmem>>, vector<2x2x128xf32>
    %c0_2 = arith.constant 0 : index
    %c0_3 = arith.constant 0 : index
    %c0_4 = arith.constant 0 : index
    %1 = vector.load %arg1[%c0_2, %c0_3, %c0_4] : memref<2x1x1xf32, #tpu.memory_space<vmem>>, vector<2x1x1xf32>
    %2 = vector.broadcast %1 : vector<2x1x1xf32> to vector<2x2x128xf32>
    %3 = arith.mulf %0, %2 : vector<2x2x128xf32>
    %c0_5 = arith.constant 0 : index
    %c0_6 = arith.constant 0 : index
    %c0_7 = arith.constant 0 : index
    %4 = vector.load %arg3[%c0_5, %c0_6, %c0_7] : memref<2x2x128xf32, #tpu.memory_space<vmem>>, vector<2x2x128xf32>
    tpu.vector_store %arg3[%c0_5, %c0_6, %c0_7], %3 {strides = array<i32>} : memref<2x2x128xf32, #tpu.memory_space<vmem>>, vector<2x2x128xf32>,
    return
  }
  func.func @transform_0(%arg0: i32) -> (i32, i32, i32) {
    %c0_i32 = arith.constant 0 : i32
    %c0_i32_0 = arith.constant 0 : i32
    %c0_i32_1 = arith.constant 0 : i32
    %c0_i32_2 = arith.constant 0 : i32
    return %c0_i32, %c0_i32_0, %c0_i32_1 : i32, i32, i32
  }
  func.func @transform_1(%arg0: i32) -> (i32, i32, i32) {
    %c0_i32 = arith.constant 0 : i32
    %c0_i32_0 = arith.constant 0 : i32
    %c0_i32_1 = arith.constant 0 : i32
    return %c0_i32, %arg0, %c0_i32_0 : i32, i32, i32
  }
  func.func @transform_2(%arg0: i32) -> (i32, i32, i32) {
    %c0_i32 = arith.constant 0 : i32
    %c0_i32_0 = arith.constant 0 : i32
    %c0_i32_1 = arith.constant 0 : i32
    return %c0_i32, %arg0, %c0_i32_0 : i32, i32, i32
  }
}

</mosaic_0001>

<bundles_post_ra>
// kernel: tpu_custom_call.1
= control target key start
LH: loop header
LB: loop body
LE: loop exit
PB: predicated region body
PF: predicated region fallthrough
CT: control target
= control target key end

     0   :  { %v83_v1 = vmov 0   ;;  %s117_s0 = inlined_call_operand.vmem [shape: f32[2,1,1], index: 0, kind: input, shape index: {}]   ;;  %s118_s1 = inlined_call_operand.vmem [shape: f32[2,2,128], index: 1, kind: input, shape index: {}]   ;;  %s119_s2 = inlined_call_operand.hbm [shape: f32[2,2,128], index: 2, kind: output, shape index: {}]  }
   0x1   :  { %v54_v0 = vld [vmem:[%s117_s0] ss:$0 sm:$0xff]  ;;  %60 = vset.pattern.permute.xlu0 %v83_v1 }
   0x2   :  { %7 = vsyncpa [#allocation3], 0  ;;  %27 = vperm.xlu0 %60, %v54_v0   ;;  %v55_v2 = vld [vmem:[%s117_s0 + $0x1] ss:$0 sm:$0xff]  ;;  %s84_s15 = smov [#allocation2]  }
   0x3   :  { %v12_v3 = vld [vmem:[%s118_s1] sm:$0x3]  ;;  %s43_s16 = sshll.u32 %s84_s15, 4  ;;  %v13_v6 = vld [vmem:[%s118_s1 + $0x2] sm:$0x3]  ;;  %s44_s16 = int_to_ptr.vmem [resolvable:$true] %s43_s16 }
   0x4   :  { %s61_s19 = scalar_lea.vmem %s44_s16, 64  ;;  %p66_p1 = scmp.lt.s32.totalorder %s44_s16, %s44_s16 }
   0x5   :  { %p62_p0 = scmp.ne.s32.totalorder %s44_s16, %s61_s19  ;;  %p67_p2 = scmp.lt.s32.totalorder %s61_s19, %s61_s19 }
   0x6   :  { %31 = vperm.xlu0 %60, %v55_v2  }
   0x7   :  { %p68_p3 = por %p67_p2, %p66_p1 }
   0x9   :  { %p69_p4 = pnand %p68_p3, %p62_p0 }
  0x7d   :  { %v28_v4 = vpop.permute.xlu0 %27 }
  0x7e   :  { %v34_v5 = vmul.f32 %v28_v4, %v12_v3 }
  0x80   :  { %36 = vst [vmem:[#allocation2] sm:$0x3] %v34_v5 }
  0x81   :  { %v32_v7 = vpop.permute.xlu0 %31 }
  0x82   :  { %v35_v8 = vmul.f32 %v32_v7, %v13_v6 }
  0x84   :  { %37 = vst [vmem:[#allocation2 + $0x2] sm:$0x3] %v35_v8 }
  0x85   :  { %72 = shalt.err (!%p69_p4)
}
  0x86   :  { %s85_s0 = smov 32   ;;  %s86_s20 = smov 2  }
  0x87   :  { %49 = dma.vmem_to_hbm [thread:$0]  %s44_s16, 64, %s119_s2, [#allocation3], %s85_s0, %s85_s0, %s86_s20  }
  0x88   :  { %81 = dma.done.wait [#allocation3], 64  }
  0x89   :  { %82 = vsyncadd [#allocation3], 4294967232 }
  0x8a   :  { %53 = vsyncpa [#allocation3], 1 }

</bundles_post_ra>
